<compile_context>
chip_gen: v7x
topology: tpu7x:2x2x1
jax: 0.10.0
libtpu: 0.0.40
codegen_flags: <defaults>
</compile_context>

<pallas_src>
import math

import jax
import jax.numpy as jnp
from jax.experimental import pallas as pl
from jax.experimental.pallas import tpu as pltpu


def v_critic_kernel(x_ref, w1_ref, b1_ref, w2_ref, b2_ref, w3_ref, b3_ref,
                    v_ref):
    # x_ref:  (TM, in_dim)            current row tile
    # w1_ref: (in_dim, H), b1_ref: (1, H)
    # w2_ref: (H, H),      b2_ref: (1, H)
    # w3_ref: (H, 1),      b3_ref: (1, 1)
    # v_ref:  (TM, 1)
    x = x_ref[...]
    h = jnp.dot(x, w1_ref[...], preferred_element_type=jnp.float32) + b1_ref[...]
    h = jnp.maximum(h, 0.0)
    h = jnp.dot(h, w2_ref[...], preferred_element_type=jnp.float32) + b2_ref[...]
    h = jnp.maximum(h, 0.0)
    v = jnp.dot(h, w3_ref[...], preferred_element_type=jnp.float32) + b3_ref[...]
    v_ref[...] = v


def v_critic_forward(x, params, *, tm_max=2048):
    """x: (..., num_state + num_agent) float32.  Returns (..., 1) float32."""
    w1, b1, w2, b2, w3, b3 = params
    in_dim, H = w1.shape
    assert x.shape[-1] == in_dim

    lead = x.shape[:-1]
    M = int(math.prod(lead)) if lead else 1
    xf = x.reshape(M, in_dim)

    # Tile rows: largest multiple of 8 (f32 sublane) up to tm_max.
    TM = tm_max if M >= tm_max else max(8, ((M + 7) // 8) * 8)
    Mp = ((M + TM - 1) // TM) * TM
    if Mp != M:
        xf = jnp.pad(xf, ((0, Mp - M), (0, 0)))  # padded rows are sliced off below

    grid = (Mp // TM,)

    flops = 2 * Mp * (in_dim * H + H * H + H * 1)
    bytes_accessed = 4 * (Mp * in_dim + Mp * 1        # activations in / out
                          + in_dim * H + H * H + H    # weights
                          + H + H + 1)                # biases
    cost = pl.CostEstimate(flops=flops, transcendentals=0,
                           bytes_accessed=bytes_accessed)

    const = lambda i: (0, 0)  # weights / biases stay resident across the grid

    out = pl.pallas_call(
        v_critic_kernel,
        out_shape=jax.ShapeDtypeStruct((Mp, 1), jnp.float32),
        grid=grid,
        in_specs=[
            pl.BlockSpec((TM, in_dim), lambda i: (i, 0)),   # x tile (pipelined)
            pl.BlockSpec((in_dim, H), const),               # fc1 weight
            pl.BlockSpec((1, H), const),                    # fc1 bias
            pl.BlockSpec((H, H), const),                    # fc2 weight
            pl.BlockSpec((1, H), const),                    # fc2 bias
            pl.BlockSpec((H, 1), const),                    # state_value weight
            pl.BlockSpec((1, 1), const),                    # state_value bias
        ],
        out_specs=pl.BlockSpec((TM, 1), lambda i: (i, 0)),
        compiler_params=pltpu.CompilerParams(
            dimension_semantics=("parallel",)),             # megacore on v7x
        cost_estimate=cost,
    )(xf, w1, b1, w2, b2, w3, b3)

    return out[:M].reshape(*lead, 1)


def reference_forward(x, params):
    """Pure-JAX reference mirroring the PyTorch V_critic.forward."""
    w1, b1, w2, b2, w3, b3 = params
    h = jnp.maximum(x @ w1 + b1, 0.0)
    h = jnp.maximum(h @ w2 + b2, 0.0)
    return h @ w3 + b3


def init_params(key, num_state, num_agent, num_hidden):
    """Deterministic synthetic init; weights stored as (in, out)."""
    k = jax.random.split(key, 6)
    in_dim = num_state + num_agent
    w1 = jax.random.normal(k[0], (in_dim, num_hidden), jnp.float32) * 0.1
    b1 = jax.random.normal(k[1], (1, num_hidden), jnp.float32) * 0.1
    w2 = jax.random.normal(k[2], (num_hidden, num_hidden), jnp.float32) * 0.1
    b2 = jax.random.normal(k[3], (1, num_hidden), jnp.float32) * 0.1
    w3 = jax.random.normal(k[4], (num_hidden, 1), jnp.float32) * 0.1
    b3 = jax.random.normal(k[5], (1, 1), jnp.float32) * 0.1
    return (w1, b1, w2, b2, w3, b3)


if __name__ == "__main__":
    num_state, num_agent, num_hidden = 8, 3, 32
    batch = 4

    key = jax.random.PRNGKey(0)
    k_obs, k_params = jax.random.split(key)

    # Build the module's input the way V_critic.v does: concat(obs, agent one-hot).
    obs = jax.random.normal(k_obs, (batch, num_agent, num_state), jnp.float32)
    agent_id = jnp.broadcast_to(
        jnp.eye(num_agent, dtype=jnp.float32)[None, :, :],
        (batch, num_agent, num_agent))
    x = jnp.concatenate([obs, agent_id], axis=-1)      # (B, A, num_state + num_agent)

    params = init_params(k_params, num_state, num_agent, num_hidden)

    v = v_critic_forward(x, params)
    jax.block_until_ready(v)

    v_ref = reference_forward(x, params)
    assert v.shape == (batch, num_agent, 1)
    assert jnp.allclose(v, v_ref, atol=1e-5, rtol=1e-5)

    print("KERNEL_OK")
</pallas_src>

<mosaic_0001>
module attributes {stable_mosaic.version = 11 : i64} {
  func.func @v_critic_kernel(%arg0: i32, %arg1: memref<16x11xf32, #tpu.memory_space<vmem>>, %arg2: memref<11x32xf32, #tpu.memory_space<vmem>>, %arg3: memref<1x32xf32, #tpu.memory_space<vmem>>, %arg4: memref<32x32xf32, #tpu.memory_space<vmem>>, %arg5: memref<1x32xf32, #tpu.memory_space<vmem>>, %arg6: memref<32x1xf32, #tpu.memory_space<vmem>>, %arg7: memref<1x1xf32, #tpu.memory_space<vmem>>, %arg8: memref<16x1xf32, #tpu.memory_space<vmem>>) attributes {dimension_semantics = [#tpu.dimension_semantics<parallel>], iteration_bounds = array<i64: 1>, scalar_prefetch = 0 : i64, scratch_operands = 0 : i64, tpu.core_type = #tpu.core_type<tc>, window_params = [{transform_indices = @transform_0, window_bounds = array<i64: 16, 11>}, {pipeline_mode = #tpu.pipeline_mode<synchronous>, transform_indices = @transform_1, window_bounds = array<i64: 11, 32>}, {pipeline_mode = #tpu.pipeline_mode<synchronous>, transform_indices = @transform_2, window_bounds = array<i64: 1, 32>}, {pipeline_mode = #tpu.pipeline_mode<synchronous>, transform_indices = @transform_3, window_bounds = array<i64: 32, 32>}, {pipeline_mode = #tpu.pipeline_mode<synchronous>, transform_indices = @transform_4, window_bounds = array<i64: 1, 32>}, {pipeline_mode = #tpu.pipeline_mode<synchronous>, transform_indices = @transform_5, window_bounds = array<i64: 32, 1>}, {pipeline_mode = #tpu.pipeline_mode<synchronous>, transform_indices = @transform_6, window_bounds = array<i64: 1, 1>}, {transform_indices = @transform_7, window_bounds = array<i64: 16, 1>}]} {
    %c0 = arith.constant 0 : index
    %c0_0 = arith.constant 0 : index
    %0 = vector.load %arg1[%c0, %c0_0] : memref<16x11xf32, #tpu.memory_space<vmem>>, vector<16x11xf32>
    %c0_1 = arith.constant 0 : index
    %c0_2 = arith.constant 0 : index
    %1 = vector.load %arg2[%c0_1, %c0_2] : memref<11x32xf32, #tpu.memory_space<vmem>>, vector<11x32xf32>
    %cst = arith.constant dense<0.000000e+00> : vector<16x32xf32>
    %2 = tpu.matmul %0, %1, %cst {dimension_numbers = #tpu.dot_dimension_numbers<[1], [0], [0], [1], [0, 0, 1, 1], [], []>} : vector<16x11xf32>, vector<11x32xf32>, vector<16x32xf32> -> vector<16x32xf32>
    %c0_3 = arith.constant 0 : index
    %c0_4 = arith.constant 0 : index
    %3 = vector.load %arg3[%c0_3, %c0_4] : memref<1x32xf32, #tpu.memory_space<vmem>>, vector<1x32xf32>
    %4 = vector.broadcast %3 : vector<1x32xf32> to vector<16x32xf32>
    %5 = arith.addf %2, %4 : vector<16x32xf32>
    %cst_5 = arith.constant 0.000000e+00 : f32
    %6 = vector.broadcast %cst_5 : f32 to vector<16x32xf32>
    %7 = arith.maximumf %5, %6 : vector<16x32xf32>
    %c0_6 = arith.constant 0 : index
    %c0_7 = arith.constant 0 : index
    %8 = vector.load %arg4[%c0_6, %c0_7] : memref<32x32xf32, #tpu.memory_space<vmem>>, vector<32x32xf32>
    %cst_8 = arith.constant dense<0.000000e+00> : vector<16x32xf32>
    %9 = tpu.matmul %7, %8, %cst_8 {dimension_numbers = #tpu.dot_dimension_numbers<[1], [0], [0], [1], [0, 0, 1, 1], [], []>} : vector<16x32xf32>, vector<32x32xf32>, vector<16x32xf32> -> vector<16x32xf32>
    %c0_9 = arith.constant 0 : index
    %c0_10 = arith.constant 0 : index
    %10 = vector.load %arg5[%c0_9, %c0_10] : memref<1x32xf32, #tpu.memory_space<vmem>>, vector<1x32xf32>
    %11 = vector.broadcast %10 : vector<1x32xf32> to vector<16x32xf32>
    %12 = arith.addf %9, %11 : vector<16x32xf32>
    %cst_11 = arith.constant 0.000000e+00 : f32
    %13 = vector.broadcast %cst_11 : f32 to vector<16x32xf32>
    %14 = arith.maximumf %12, %13 : vector<16x32xf32>
    %c0_12 = arith.constant 0 : index
    %c0_13 = arith.constant 0 : index
    %15 = vector.load %arg6[%c0_12, %c0_13] : memref<32x1xf32, #tpu.memory_space<vmem>>, vector<32x1xf32>
    %cst_14 = arith.constant dense<0.000000e+00> : vector<16x1xf32>
    %16 = tpu.matmul %14, %15, %cst_14 {dimension_numbers = #tpu.dot_dimension_numbers<[1], [0], [0], [1], [0, 0, 1, 1], [], []>} : vector<16x32xf32>, vector<32x1xf32>, vector<16x1xf32> -> vector<16x1xf32>
    %c0_15 = arith.constant 0 : index
    %c0_16 = arith.constant 0 : index
    %17 = vector.load %arg7[%c0_15, %c0_16] : memref<1x1xf32, #tpu.memory_space<vmem>>, vector<1x1xf32>
    %18 = vector.broadcast %17 : vector<1x1xf32> to vector<16x1xf32>
    %19 = arith.addf %16, %18 : vector<16x1xf32>
    %c0_17 = arith.constant 0 : index
    %c0_18 = arith.constant 0 : index
    %20 = vector.load %arg8[%c0_17, %c0_18] : memref<16x1xf32, #tpu.memory_space<vmem>>, vector<16x1xf32>
    tpu.vector_store %arg8[%c0_17, %c0_18], %19 {strides = array<i32>} : memref<16x1xf32, #tpu.memory_space<vmem>>, vector<16x1xf32>,
    return
  }
  func.func @transform_0(%arg0: i32) -> (i32, i32) {
    %c0_i32 = arith.constant 0 : i32
    %c0_i32_0 = arith.constant 0 : i32
    return %arg0, %c0_i32 : i32, i32
  }
  func.func @transform_1(%arg0: i32) -> (i32, i32) {
    %c0_i32 = arith.constant 0 : i32
    %c0_i32_0 = arith.constant 0 : i32
    %c0_i32_1 = arith.constant 0 : i32
    return %c0_i32, %c0_i32_0 : i32, i32
  }
  func.func @transform_2(%arg0: i32) -> (i32, i32) {
    %c0_i32 = arith.constant 0 : i32
    %c0_i32_0 = arith.constant 0 : i32
    %c0_i32_1 = arith.constant 0 : i32
    return %c0_i32, %c0_i32_0 : i32, i32
  }
  func.func @transform_3(%arg0: i32) -> (i32, i32) {
    %c0_i32 = arith.constant 0 : i32
    %c0_i32_0 = arith.constant 0 : i32
    %c0_i32_1 = arith.constant 0 : i32
    return %c0_i32, %c0_i32_0 : i32, i32
  }
  func.func @transform_4(%arg0: i32) -> (i32, i32) {
    %c0_i32 = arith.constant 0 : i32
    %c0_i32_0 = arith.constant 0 : i32
    %c0_i32_1 = arith.constant 0 : i32
    return %c0_i32, %c0_i32_0 : i32, i32
  }
  func.func @transform_5(%arg0: i32) -> (i32, i32) {
    %c0_i32 = arith.constant 0 : i32
    %c0_i32_0 = arith.constant 0 : i32
    %c0_i32_1 = arith.constant 0 : i32
    return %c0_i32, %c0_i32_0 : i32, i32
  }
  func.func @transform_6(%arg0: i32) -> (i32, i32) {
    %c0_i32 = arith.constant 0 : i32
    %c0_i32_0 = arith.constant 0 : i32
    %c0_i32_1 = arith.constant 0 : i32
    return %c0_i32, %c0_i32_0 : i32, i32
  }
  func.func @transform_7(%arg0: i32) -> (i32, i32) {
    %c0_i32 = arith.constant 0 : i32
    %c0_i32_0 = arith.constant 0 : i32
    return %arg0, %c0_i32 : i32, i32
  }
}

</mosaic_0001>

<bundles_post_ra>
// kernel: tpu_custom_call.1
= control target key start
LH: loop header
LB: loop body
LE: loop exit
PB: predicated region body
PF: predicated region fallthrough
CT: control target
= control target key end

     0   :  { %s596_s0 = inlined_call_operand.vmem [shape: f32[16,11], index: 0, kind: input, shape index: {}]   ;;  %s597_s1 = inlined_call_operand.hbm [shape: f32[11,32], index: 1, kind: input, shape index: {}]   ;;  %s598_s2 = inlined_call_operand.hbm [shape: f32[1,32], index: 2, kind: input, shape index: {}]   ;;  %s599_s3 = inlined_call_operand.vmem [shape: f32[32,32], index: 3, kind: input, shape index: {}]   ;;  %s600_s4 = inlined_call_operand.vmem [shape: f32[1,32], index: 4, kind: input, shape index: {}]   ;;  %s601_s5 = inlined_call_operand.vmem [shape: f32[32,1], index: 5, kind: input, shape index: {}]   ;;  %s602_s6 = inlined_call_operand.<no memory space> [shape: f32[1,1], index: 6, kind: input, shape index: {}]   ;;  %s603_s7 = inlined_call_operand.vmem [shape: f32[16,1], index: 7, kind: output, shape index: {}]  }
   0x1   :  { %v12_v0 = vstv %s602_s6 }
   0x2   :  { %13 = vst [vmem:[#allocation2] sm:$0x1] %v12_v0 }
   0x3   :  { %14 = vsyncpa [#allocation4], 0 }
   0x4   :  { %15 = vsyncpa [#allocation6], 0  ;;  %s479_s26 = smov [#allocation3]   ;;  %s431_s30 = scalar_lea.hbm %s597_s1, 256 }
   0x5   :  { %s23_s27 = sshll.u32 %s479_s26, 4  ;;  %p432_p0 = scmp.ne.s32.totalorder %s597_s1, %s431_s30  ;;  %s24_s27 = int_to_ptr.vmem [resolvable:$true] %s23_s27 }
   0x6   :  { %p435_p1 = scmp.lt.u32.totalorder %s431_s30, %s597_s1 }
   0x8   :  { %p437_p2 = pnand %p435_p1, %p432_p0 }
   0xa   :  { %440 = shalt.err (!%p437_p2)
}
   0xb   :  { %s441_s6 = scalar_lea.vmem %s24_s27, 256  ;;  %p446_p4 = scmp.lt.s32.totalorder %s24_s27, %s24_s27 }
   0xc   :  { %p442_p3 = scmp.ne.s32.totalorder %s24_s27, %s441_s6  ;;  %p447_p5 = scmp.lt.s32.totalorder %s441_s6, %s441_s6 }
   0xe   :  { %p448_p6 = por %p447_p5, %p446_p4 }
  0x10   :  { %p449_p7 = pnand %p448_p6, %p442_p3 }
  0x12   :  { %452 = shalt.err (!%p449_p7)
}
  0x13   :  { %s480_s12 = smov 128   ;;  %s481_s13 = smov 8  }
  0x14   :  { %29 = dma.hbm_to_vmem [thread:$0]  %s597_s1, 256, %s24_s27, [#allocation4], %s480_s12, %s480_s12, %s481_s13  }
  0x15   :  { %s482_s16 = smov [#allocation5]   ;;  %s453_s20 = scalar_lea.hbm %s598_s2, 16 }
  0x16   :  { %s36_s17 = sshll.u32 %s482_s16, 4  ;;  %p454_p8 = scmp.ne.s32.totalorder %s598_s2, %s453_s20  ;;  %s37_s17 = int_to_ptr.vmem [resolvable:$true] %s36_s17 }
  0x17   :  { %p457_p9 = scmp.lt.u32.totalorder %s453_s20, %s598_s2 }
  0x19   :  { %p459_p10 = pnand %p457_p9, %p454_p8 }
  0x1b   :  { %462 = shalt.err (!%p459_p10)
}
  0x1c   :  { %s463_s25 = scalar_lea.vmem %s37_s17, 16  ;;  %s467_s1 = scalar_lea.vmem %s37_s17, 32 }
  0x1d   :  { %p464_p11 = scmp.ne.s32.totalorder %s37_s17, %s463_s25  ;;  %p468_p12 = scmp.lt.s32.totalorder %s37_s17, %s37_s17 }
  0x1e   :  { %p469_p13 = scmp.lt.s32.totalorder %s467_s1, %s463_s25 }
  0x20   :  { %p470_p0 = por %p469_p13, %p468_p12 }
  0x22   :  { %p471_p1 = pnand %p470_p0, %p464_p11 }
  0x24   :  { %474 = shalt.err (!%p471_p1)
}
  0x25   :  { %39 = dma.hbm_to_vmem [thread:$0]  %s598_s2, 16, %s37_s17, [#allocation6]  }
  0x26   :  { %475 = dma.done.wait [#allocation4], 256  }
  0x27   :  { %476 = vsyncadd [#allocation4], 4294967040 }
  0x28   :  { %477 = dma.done.wait [#allocation6], 16  }
  0x29   :  { %478 = vsyncadd [#allocation6], 4294967280  ;;  %vm72_vm0 = vcmask 1042432   ;;  %vm65_vm1 = vcmask 89088   ;;  %vm483_vm2 = vmmov 1   ;;  %v56_v1 = vld [vmem:[#allocation3] sm:$0xff] }
  0x2a   :  { %vm405_vm3 = vmpackc.low %vm72_vm0, %vm483_vm2  ;;  %v57_v2 = vld [vmem:[#allocation3 + $0x8] sm:$0x7]  ;;  %v54_v3 = vld [vmem:[%s596_s0] sm:$0xff]  ;;  %vm164_vm4 = vcmask 261120   ;;  %vm340_vm5 = vcmask 7168  }
  0x2b   :  { %v404_v4 = vpack.c.bf16 %v57_v2, %v56_v1  ;;  %379 = vmatprep.mubr.msk.f32.mxu0 %vm65_vm1, %v54_v3  ;;  %v153_v5 = vld [vmem:[%s599_s3] sm:$0xff]  ;;  %v154_v6 = vld [vmem:[%s599_s3 + $0x8] sm:$0xff]  ;;  %v155_v9 = vld [vmem:[%s599_s3 + $0x10] sm:$0xff] }
  0x2c   :  { %v410_v7 = vpack.c.bf16 %v154_v6, %v153_v5  ;;  %v55_v8 = vld [vmem:[%s596_s0 + $0x8] sm:$0xff]  ;;  %v156_v10 = vld [vmem:[%s599_s3 + $0x18] sm:$0xff]  ;;  %v248_v12 = vld [vmem:[%s601_s5] sm:$0xff] }
  0x2d   :  { %406 = vmatprep.subr.msk.bf16.mxu0 %vm405_vm3, %v404_v4  ;;  %v414_v11 = vpack.c.bf16 %v156_v10, %v155_v9  ;;  %v249_v13 = vld [vmem:[%s601_s5 + $0x8] sm:$0xff]  ;;  %v349_v15 = vld [vmem:[#allocation5] ss:$0 sm:$0xff]  ;;  %v251_v23 = vld [vmem:[%s601_s5 + $0x18] sm:$0xff] }
  0x2e   :  { %409 = vmatpush3.bf16.msk.msra.mxu0 %vm405_vm3, %v404_v4  ;;  %411 = vmatprep.subr.bf16.mxu1 %v410_v7  ;;  %v418_v14 = vpack.c.bf16 %v249_v13, %v248_v12  ;;  %v250_v22 = vld [vmem:[%s601_s5 + $0x10] sm:$0xff]  ;;  %v353_v25 = vld [vmem:[%s600_s4] ss:$0 sm:$0xff] }
  0x2f   :  { %413 = vmatpush3.bf16.msra.mxu1 %v410_v7  ;;  %v422_v24 = vpack.c.bf16 %v251_v23, %v250_v22  ;;  %v356_v32 = vld [vmem:[#allocation2] ss:$0 sm:$0xff] }
  0x30   :  { %415 = vmatprep.subr.bf16.mxu1 %v414_v11  ;;  %419 = vmatprep.subr.bf16.mxu0 %v418_v14 }
  0x31   :  { %380 = vmatmul.mubr.msk.f32.vlgmr.msra.gmra.mrb[0].mxu0 %vm65_vm1, %v55_v8 }
  0x32   :  { %421 = vmatpush3.bf16.msra.mxu0 %v418_v14 }
  0x33   :  { %417 = vmatpush3.bf16.msra.mxu1 %v414_v11  ;;  %423 = vmatprep.subr.bf16.mxu0 %v422_v24 }
  0x36   :  { %425 = vmatpush3.bf16.msra.mxu0 %v422_v24 }
 0x104   :  { %v381_v16 = vpop.f32.mrb[0].mxu0 }
 0x105   :  { %v148_v17 = vadd.f32 %v381_v16, %v349_v15  ;;  %v142_v18 = vpop.f32.mrb[1].mxu0 }
 0x106   :  { %v143_v19 = vadd.f32 %v349_v15, %v142_v18 }
 0x107   :  { %v152_v21 = vmax.f32 %v148_v17, 0.0 }
 0x108   :  { %v151_v20 = vmax.f32 %v143_v19, 0.0 }
 0x10a   :  { %390 = vmatprep.mubr.msk.f32.mxu1 %vm164_vm4, %v151_v20 }
 0x10b   :  { %391 = vmatmul.mubr.msk.f32.vlgmr.msra.gmra.mrb[0].mxu1 %vm164_vm4, %v152_v21 }
 0x1de   :  { %v392_v26 = vpop.f32.mrb[0].mxu1 }
 0x1df   :  { %v243_v27 = vadd.f32 %v392_v26, %v353_v25  ;;  %v237_v28 = vpop.f32.mrb[1].mxu1 }
 0x1e0   :  { %v238_v29 = vadd.f32 %v353_v25, %v237_v28 }
 0x1e1   :  { %v247_v31 = vmax.f32 %v243_v27, 0.0 }
 0x1e2   :  { %v246_v30 = vmax.f32 %v238_v29, 0.0 }
 0x1e4   :  { %401 = vmatprep.mubr.msk.f32.mxu0 %vm164_vm4, %v246_v30 }
 0x1e5   :  { %402 = vmatmul.mubr.msk.f32.vlgmr.msra.gmra.mrb[2].mxu0 %vm164_vm4, %v247_v31 }
 0x2b8   :  { %v403_v33 = vpop.f32.mrb[2].mxu0 }
 0x2b9   :  { %v337_v34 = vadd.f32 %v403_v33, %v356_v32  ;;  %v331_v35 = vpop.f32.mrb[3].mxu0 }
 0x2ba   :  { %v332_v36 = vadd.f32 %v356_v32, %v331_v35 }
 0x2bb   :  { %342 = vst.msk [vmem:[%s603_s7 + $0x8] sm:$0xff] %vm340_vm5, %v337_v34 }
 0x2bc   :  { %341 = vst.msk [vmem:[%s603_s7] sm:$0xff] %vm340_vm5, %v332_v36 }
 0x2bd   :  { %347 = vsyncpa [#allocation4], 1 }
 0x2be   :  { %348 = vsyncpa [#allocation6], 1 }

</bundles_post_ra>
